<compile_context>
chip_gen: v7x
topology: tpu7x:2x2x1
jax: 0.10.0
libtpu: 0.0.40
codegen_flags: <defaults>
</compile_context>

<pallas_src>
import jax
import jax.numpy as jnp
from jax import lax
from jax.experimental import pallas as pl
from jax.experimental.pallas import tpu as pltpu


def _gru_kernel(x_ref, wih_ref, whh_ref, bias_ref, out_ref):
    """x_ref: (T*B, I) bf16; wih_ref: (I, 3H) bf16; whh_ref: (H, 3H) bf16;
    bias_ref: (2, 3H) f32 (row 0 = gate-input biases, row 1 = [0|0|b_hh_n]);
    out_ref: (T, B, H) f32.  Gate order is PyTorch r|z|n."""
    T, B, H = out_ref.shape
    H2 = 2 * H
    H3 = 3 * H

    # Prologue: ONE MXU dot for all timesteps and all three gates (bf16 x bf16
    # operands, f32 accumulation), with the input-side biases folded in.
    gx = (jnp.dot(x_ref[...], wih_ref[...], preferred_element_type=jnp.float32)
          + bias_ref[0:1, :])                              # (T*B, 3H) f32

    # Hoist loop-invariant loads / broadcasts out of the serial recurrence.
    whh = whh_ref[...]                                     # (H, 3H) bf16
    bnh = jnp.broadcast_to(bias_ref[1:2, H2:H3], (B, H))   # b_hh_n stays inside r*(...)

    h = jnp.zeros((B, H), jnp.float32)                     # PyTorch default h0 = 0
    for t in range(T):                                     # fully unrolled (static, small T)
        lo = t * B
        gxt = gx[lo:lo + B, :]                             # (B, 3H) static sublane slice
        # Single fused hidden-side matmul per step (1 MXU push/pop).
        gh = jnp.dot(h.astype(jnp.bfloat16), whh,
                     preferred_element_type=jnp.float32)   # (B, 3H) f32
        # Packed r|z sigmoid: one EUP push on a (B, 2H) vreg.
        rz = jax.nn.sigmoid(gxt[:, :H2] + gh[:, :H2])
        r = rz[:, :H]
        z = rz[:, H:H2]
        n = jnp.tanh(gxt[:, H2:H3] + r * (gh[:, H2:H3] + bnh))
        h = (1.0 - z) * n + z * h                          # f32 blend
        out_ref[t] = h.astype(out_ref.dtype)               # VMEM-resident writeback


def rnn_encoder_forward(X, w_ih, w_hh, b_ih, b_hh):
    """X: (T, B, I) f32.  w_ih: (3H, I), w_hh: (3H, H), b_*: (3H,) in PyTorch
    gate order [r | z | n].  Returns (out (T,B,H), hidden (1,B,H)) matching
    torch.nn.GRU(num_layers=1)."""
    T, B, I = X.shape
    H = w_hh.shape[1]
    f32, bf16 = jnp.float32, jnp.bfloat16

    w_ih = jnp.asarray(w_ih, f32)
    w_hh = jnp.asarray(w_hh, f32)
    b_ih = jnp.asarray(b_ih, f32)
    b_hh = jnp.asarray(b_hh, f32)

    # Fused per-gate weight slabs: columns laid out [r | z | n] for (rows @ W)
    # MXU layout; cast to bf16 once (MXU-native operand dtype on v5e/v6e/v7x).
    wih_rzn = jnp.concatenate(
        [w_ih[0:H].T, w_ih[H:2 * H].T, w_ih[2 * H:3 * H].T], axis=1).astype(bf16)   # (I, 3H)
    whh_rzn = jnp.concatenate(
        [w_hh[0:H].T, w_hh[H:2 * H].T, w_hh[2 * H:3 * H].T], axis=1).astype(bf16)   # (H, 3H)

    # Bias slab (2, 3H) f32:
    #   row 0: [b_ih_r + b_hh_r | b_ih_z + b_hh_z | b_ih_n]  (folds into gx)
    #   row 1: [      0         |       0         | b_hh_n ] (stays inside r*(...))
    bias_row0 = jnp.concatenate(
        [b_ih[0:H] + b_hh[0:H], b_ih[H:2 * H] + b_hh[H:2 * H], b_ih[2 * H:3 * H]])
    bias_row1 = jnp.concatenate(
        [jnp.zeros((2 * H,), f32), b_hh[2 * H:3 * H]])
    bias = jnp.stack([bias_row0, bias_row1], axis=0)                                 # (2, 3H)

    x2 = jnp.asarray(X, f32).reshape(T * B, I).astype(bf16)   # free reshape + one cast

    vmem = pl.BlockSpec(memory_space=pltpu.MemorySpace.VMEM)
    out = pl.pallas_call(
        _gru_kernel,
        out_shape=jax.ShapeDtypeStruct((T, B, H), f32),
        in_specs=[vmem, vmem, vmem, vmem],
        out_specs=vmem,
    )(x2, wih_rzn, whh_rzn, bias)

    hidden = out[-1:]                                # (1, B, H): final hidden state
    return out, hidden


def _gru_reference(X, w_ih, w_hh, b_ih, b_hh):
    """Pure-JAX f32 reference of the PyTorch GRU cell (for sanity check)."""
    T, B, I = X.shape
    H = w_hh.shape[1]

    def step(h, x):
        gx = x @ w_ih.T + b_ih
        gh = h @ w_hh.T + b_hh
        r = jax.nn.sigmoid(gx[:, :H] + gh[:, :H])
        z = jax.nn.sigmoid(gx[:, H:2 * H] + gh[:, H:2 * H])
        n = jnp.tanh(gx[:, 2 * H:] + r * gh[:, 2 * H:])
        h_new = (1.0 - z) * n + z * h
        return h_new, h_new

    h0 = jnp.zeros((B, H), jnp.float32)
    hN, out = lax.scan(step, h0, X)
    return out, hN[None]


def _xavier_uniform(key, shape):
    fan_out, fan_in = shape
    bound = jnp.sqrt(6.0 / (fan_in + fan_out))
    return jax.random.uniform(key, shape, jnp.float32, -bound, bound)


if __name__ == "__main__":
    # Module config: RNN_Encoder(num_input=4, num_hidden=32, dropout=0.1, num_layers=1)
    T, B, I, H = 8, 2, 4, 32

    key = jax.random.PRNGKey(0)
    k_x, k_wih, k_whh, k_bih, k_bhh = jax.random.split(key, 5)

    X = jax.random.normal(k_x, (T, B, I), jnp.float32)

    # Deterministic parameter init (xavier-uniform weights per init_seq2seq;
    # biases uniform(-1/sqrt(H), 1/sqrt(H)) like PyTorch GRU defaults).
    w_ih = _xavier_uniform(k_wih, (3 * H, I))
    w_hh = _xavier_uniform(k_whh, (3 * H, H))
    bb = 1.0 / jnp.sqrt(H)
    b_ih = jax.random.uniform(k_bih, (3 * H,), jnp.float32, -bb, bb)
    b_hh = jax.random.uniform(k_bhh, (3 * H,), jnp.float32, -bb, bb)

    out, hidden = rnn_encoder_forward(X, w_ih, w_hh, b_ih, b_hh)
    jax.block_until_ready((out, hidden))

    out_ref, hidden_ref = _gru_reference(X, w_ih, w_hh, b_ih, b_hh)
    assert out.shape == (T, B, H) and hidden.shape == (1, B, H)
    # bf16 MXU operands (f32 accumulation / gate math) => slightly looser tolerance.
    assert jnp.allclose(out, out_ref, atol=3e-2, rtol=3e-2), \
        f"max abs diff {jnp.max(jnp.abs(out - out_ref))}"
    assert jnp.allclose(hidden, hidden_ref, atol=3e-2, rtol=3e-2)

    print("KERNEL_OK")
</pallas_src>

<mosaic_0001>
module attributes {stable_mosaic.version = 11 : i64} {
  func.func @_gru_kernel(%arg0: memref<16x4xbf16, #tpu.memory_space<vmem>>, %arg1: memref<4x96xbf16, #tpu.memory_space<vmem>>, %arg2: memref<32x96xbf16, #tpu.memory_space<vmem>>, %arg3: memref<2x96xf32, #tpu.memory_space<vmem>>, %arg4: memref<8x2x32xf32, #tpu.memory_space<vmem>>) attributes {dimension_semantics = [], scalar_prefetch = 0 : i64, scratch_operands = 0 : i64, tpu.core_type = #tpu.core_type<tc>} {
    %c0 = arith.constant 0 : index
    %c0_0 = arith.constant 0 : index
    %0 = vector.load %arg0[%c0, %c0_0] : memref<16x4xbf16, #tpu.memory_space<vmem>>, vector<16x4xbf16>
    %c0_1 = arith.constant 0 : index
    %c0_2 = arith.constant 0 : index
    %1 = vector.load %arg1[%c0_1, %c0_2] : memref<4x96xbf16, #tpu.memory_space<vmem>>, vector<4x96xbf16>
    %cst = arith.constant dense<0.000000e+00> : vector<16x96xf32>
    %2 = tpu.matmul %0, %1, %cst {dimension_numbers = #tpu.dot_dimension_numbers<[1], [0], [0], [1], [0, 0, 1, 1], [], []>} : vector<16x4xbf16>, vector<4x96xbf16>, vector<16x96xf32> -> vector<16x96xf32>
    %c0_3 = arith.constant 0 : index
    %c0_4 = arith.constant 0 : index
    %3 = vector.load %arg3[%c0_3, %c0_4] : memref<2x96xf32, #tpu.memory_space<vmem>>, vector<1x96xf32>
    %4 = vector.broadcast %3 : vector<1x96xf32> to vector<16x96xf32>
    %5 = arith.addf %2, %4 : vector<16x96xf32>
    %c0_5 = arith.constant 0 : index
    %c0_6 = arith.constant 0 : index
    %6 = vector.load %arg2[%c0_5, %c0_6] : memref<32x96xbf16, #tpu.memory_space<vmem>>, vector<32x96xbf16>
    %c1 = arith.constant 1 : index
    %c64 = arith.constant 64 : index
    %7 = vector.load %arg3[%c1, %c64] : memref<2x96xf32, #tpu.memory_space<vmem>>, vector<1x32xf32>
    %8 = vector.shape_cast %7 : vector<1x32xf32> to vector<1x32xf32>
    %9 = vector.broadcast %8 : vector<1x32xf32> to vector<2x32xf32>
    %cst_7 = arith.constant 0.000000e+00 : f32
    %10 = vector.broadcast %cst_7 : f32 to vector<2x32xf32>
    %11 = vector.extract_strided_slice %5 {offsets = [0, 0], sizes = [2, 96], strides = [1, 1]} : vector<16x96xf32> to vector<2x96xf32>
    %12 = arith.truncf %10 : vector<2x32xf32> to vector<2x32xbf16>
    %cst_8 = arith.constant dense<0.000000e+00> : vector<2x96xf32>
    %13 = tpu.matmul %12, %6, %cst_8 {dimension_numbers = #tpu.dot_dimension_numbers<[1], [0], [0], [1], [0, 0, 1, 1], [], []>} : vector<2x32xbf16>, vector<32x96xbf16>, vector<2x96xf32> -> vector<2x96xf32>
    %14 = vector.extract_strided_slice %11 {offsets = [0, 0], sizes = [2, 64], strides = [1, 1]} : vector<2x96xf32> to vector<2x64xf32>
    %15 = vector.extract_strided_slice %13 {offsets = [0, 0], sizes = [2, 64], strides = [1, 1]} : vector<2x96xf32> to vector<2x64xf32>
    %16 = arith.addf %14, %15 : vector<2x64xf32>
    %17 = arith.negf %16 : vector<2x64xf32>
    %18 = math.exp %17 : vector<2x64xf32>
    %cst_9 = arith.constant 1.000000e+00 : f32
    %19 = vector.broadcast %cst_9 : f32 to vector<2x64xf32>
    %20 = arith.addf %19, %18 : vector<2x64xf32>
    %21 = arith.divf %19, %20 : vector<2x64xf32>
    %22 = vector.extract_strided_slice %21 {offsets = [0, 0], sizes = [2, 32], strides = [1, 1]} : vector<2x64xf32> to vector<2x32xf32>
    %23 = vector.extract_strided_slice %21 {offsets = [0, 32], sizes = [2, 32], strides = [1, 1]} : vector<2x64xf32> to vector<2x32xf32>
    %24 = vector.extract_strided_slice %11 {offsets = [0, 64], sizes = [2, 32], strides = [1, 1]} : vector<2x96xf32> to vector<2x32xf32>
    %25 = vector.extract_strided_slice %13 {offsets = [0, 64], sizes = [2, 32], strides = [1, 1]} : vector<2x96xf32> to vector<2x32xf32>
    %26 = arith.addf %25, %9 : vector<2x32xf32>
    %27 = arith.mulf %22, %26 : vector<2x32xf32>
    %28 = arith.addf %24, %27 : vector<2x32xf32>
    %29 = math.tanh %28 : vector<2x32xf32>
    %cst_10 = arith.constant 1.000000e+00 : f32
    %30 = vector.broadcast %cst_10 : f32 to vector<2x32xf32>
    %31 = arith.subf %30, %23 : vector<2x32xf32>
    %32 = arith.mulf %31, %29 : vector<2x32xf32>
    %33 = arith.mulf %23, %10 : vector<2x32xf32>
    %34 = arith.addf %32, %33 : vector<2x32xf32>
    %c0_11 = arith.constant 0 : index
    %c0_12 = arith.constant 0 : index
    %c0_13 = arith.constant 0 : index
    %35 = vector.load %arg4[%c0_11, %c0_12, %c0_13] : memref<8x2x32xf32, #tpu.memory_space<vmem>>, vector<1x2x32xf32>
    %36 = vector.shape_cast %35 : vector<1x2x32xf32> to vector<2x32xf32>
    %37 = vector.shape_cast %34 : vector<2x32xf32> to vector<1x2x32xf32>
    tpu.vector_store %arg4[%c0_11, %c0_12, %c0_13], %37 {strides = array<i32>} : memref<8x2x32xf32, #tpu.memory_space<vmem>>, vector<1x2x32xf32>,
    %38 = vector.extract_strided_slice %5 {offsets = [2, 0], sizes = [2, 96], strides = [1, 1]} : vector<16x96xf32> to vector<2x96xf32>
    %39 = arith.truncf %34 : vector<2x32xf32> to vector<2x32xbf16>
    %cst_14 = arith.constant dense<0.000000e+00> : vector<2x96xf32>
    %40 = tpu.matmul %39, %6, %cst_14 {dimension_numbers = #tpu.dot_dimension_numbers<[1], [0], [0], [1], [0, 0, 1, 1], [], []>} : vector<2x32xbf16>, vector<32x96xbf16>, vector<2x96xf32> -> vector<2x96xf32>
    %41 = vector.extract_strided_slice %38 {offsets = [0, 0], sizes = [2, 64], strides = [1, 1]} : vector<2x96xf32> to vector<2x64xf32>
    %42 = vector.extract_strided_slice %40 {offsets = [0, 0], sizes = [2, 64], strides = [1, 1]} : vector<2x96xf32> to vector<2x64xf32>
    %43 = arith.addf %41, %42 : vector<2x64xf32>
    %44 = arith.negf %43 : vector<2x64xf32>
    %45 = math.exp %44 : vector<2x64xf32>
    %cst_15 = arith.constant 1.000000e+00 : f32
    %46 = vector.broadcast %cst_15 : f32 to vector<2x64xf32>
    %47 = arith.addf %46, %45 : vector<2x64xf32>
    %48 = arith.divf %46, %47 : vector<2x64xf32>
    %49 = vector.extract_strided_slice %48 {offsets = [0, 0], sizes = [2, 32], strides = [1, 1]} : vector<2x64xf32> to vector<2x32xf32>
    %50 = vector.extract_strided_slice %48 {offsets = [0, 32], sizes = [2, 32], strides = [1, 1]} : vector<2x64xf32> to vector<2x32xf32>
    %51 = vector.extract_strided_slice %38 {offsets = [0, 64], sizes = [2, 32], strides = [1, 1]} : vector<2x96xf32> to vector<2x32xf32>
    %52 = vector.extract_strided_slice %40 {offsets = [0, 64], sizes = [2, 32], strides = [1, 1]} : vector<2x96xf32> to vector<2x32xf32>
    %53 = arith.addf %52, %9 : vector<2x32xf32>
    %54 = arith.mulf %49, %53 : vector<2x32xf32>
    %55 = arith.addf %51, %54 : vector<2x32xf32>
    %56 = math.tanh %55 : vector<2x32xf32>
    %cst_16 = arith.constant 1.000000e+00 : f32
    %57 = vector.broadcast %cst_16 : f32 to vector<2x32xf32>
    %58 = arith.subf %57, %50 : vector<2x32xf32>
    %59 = arith.mulf %58, %56 : vector<2x32xf32>
    %60 = arith.mulf %50, %34 : vector<2x32xf32>
    %61 = arith.addf %59, %60 : vector<2x32xf32>
    %c1_17 = arith.constant 1 : index
    %c0_18 = arith.constant 0 : index
    %c0_19 = arith.constant 0 : index
    %62 = vector.load %arg4[%c1_17, %c0_18, %c0_19] : memref<8x2x32xf32, #tpu.memory_space<vmem>>, vector<1x2x32xf32>
    %63 = vector.shape_cast %62 : vector<1x2x32xf32> to vector<2x32xf32>
    %64 = vector.shape_cast %61 : vector<2x32xf32> to vector<1x2x32xf32>
    tpu.vector_store %arg4[%c1_17, %c0_18, %c0_19], %64 {strides = array<i32>} : memref<8x2x32xf32, #tpu.memory_space<vmem>>, vector<1x2x32xf32>,
    %65 = vector.extract_strided_slice %5 {offsets = [4, 0], sizes = [2, 96], strides = [1, 1]} : vector<16x96xf32> to vector<2x96xf32>
    %66 = arith.truncf %61 : vector<2x32xf32> to vector<2x32xbf16>
    %cst_20 = arith.constant dense<0.000000e+00> : vector<2x96xf32>
    %67 = tpu.matmul %66, %6, %cst_20 {dimension_numbers = #tpu.dot_dimension_numbers<[1], [0], [0], [1], [0, 0, 1, 1], [], []>} : vector<2x32xbf16>, vector<32x96xbf16>, vector<2x96xf32> -> vector<2x96xf32>
    %68 = vector.extract_strided_slice %65 {offsets = [0, 0], sizes = [2, 64], strides = [1, 1]} : vector<2x96xf32> to vector<2x64xf32>
    %69 = vector.extract_strided_slice %67 {offsets = [0, 0], sizes = [2, 64], strides = [1, 1]} : vector<2x96xf32> to vector<2x64xf32>
    %70 = arith.addf %68, %69 : vector<2x64xf32>
    %71 = arith.negf %70 : vector<2x64xf32>
    %72 = math.exp %71 : vector<2x64xf32>
    %cst_21 = arith.constant 1.000000e+00 : f32
    %73 = vector.broadcast %cst_21 : f32 to vector<2x64xf32>
    %74 = arith.addf %73, %72 : vector<2x64xf32>
    %75 = arith.divf %73, %74 : vector<2x64xf32>
    %76 = vector.extract_strided_slice %75 {offsets = [0, 0], sizes = [2, 32], strides = [1, 1]} : vector<2x64xf32> to vector<2x32xf32>
    %77 = vector.extract_strided_slice %75 {offsets = [0, 32], sizes = [2, 32], strides = [1, 1]} : vector<2x64xf32> to vector<2x32xf32>
    %78 = vector.extract_strided_slice %65 {offsets = [0, 64], sizes = [2, 32], strides = [1, 1]} : vector<2x96xf32> to vector<2x32xf32>
    %79 = vector.extract_strided_slice %67 {offsets = [0, 64], sizes = [2, 32], strides = [1, 1]} : vector<2x96xf32> to vector<2x32xf32>
    %80 = arith.addf %79, %9 : vector<2x32xf32>
    %81 = arith.mulf %76, %80 : vector<2x32xf32>
    %82 = arith.addf %78, %81 : vector<2x32xf32>
    %83 = math.tanh %82 : vector<2x32xf32>
    %cst_22 = arith.constant 1.000000e+00 : f32
    %84 = vector.broadcast %cst_22 : f32 to vector<2x32xf32>
    %85 = arith.subf %84, %77 : vector<2x32xf32>
    %86 = arith.mulf %85, %83 : vector<2x32xf32>
    %87 = arith.mulf %77, %61 : vector<2x32xf32>
    %88 = arith.addf %86, %87 : vector<2x32xf32>
    %c2 = arith.constant 2 : index
    %c0_23 = arith.constant 0 : index
    %c0_24 = arith.constant 0 : index
    %89 = vector.load %arg4[%c2, %c0_23, %c0_24] : memref<8x2x32xf32, #tpu.memory_space<vmem>>, vector<1x2x32xf32>
    %90 = vector.shape_cast %89 : vector<1x2x32xf32> to vector<2x32xf32>
    %91 = vector.shape_cast %88 : vector<2x32xf32> to vector<1x2x32xf32>
    tpu.vector_store %arg4[%c2, %c0_23, %c0_24], %91 {strides = array<i32>} : memref<8x2x32xf32, #tpu.memory_space<vmem>>, vector<1x2x32xf32>,
    %92 = vector.extract_strided_slice %5 {offsets = [6, 0], sizes = [2, 96], strides = [1, 1]} : vector<16x96xf32> to vector<2x96xf32>
    %93 = arith.truncf %88 : vector<2x32xf32> to vector<2x32xbf16>
    %cst_25 = arith.constant dense<0.000000e+00> : vector<2x96xf32>
    %94 = tpu.matmul %93, %6, %cst_25 {dimension_numbers = #tpu.dot_dimension_numbers<[1], [0], [0], [1], [0, 0, 1, 1], [], []>} : vector<2x32xbf16>, vector<32x96xbf16>, vector<2x96xf32> -> vector<2x96xf32>
    %95 = vector.extract_strided_slice %92 {offsets = [0, 0], sizes = [2, 64], strides = [1, 1]} : vector<2x96xf32> to vector<2x64xf32>
    %96 = vector.extract_strided_slice %94 {offsets = [0, 0], sizes = [2, 64], strides = [1, 1]} : vector<2x96xf32> to vector<2x64xf32>
    %97 = arith.addf %95, %96 : vector<2x64xf32>
    %98 = arith.negf %97 : vector<2x64xf32>
    %99 = math.exp %98 : vector<2x64xf32>
    %cst_26 = arith.constant 1.000000e+00 : f32
    %100 = vector.broadcast %cst_26 : f32 to vector<2x64xf32>
    %101 = arith.addf %100, %99 : vector<2x64xf32>
    %102 = arith.divf %100, %101 : vector<2x64xf32>
    %103 = vector.extract_strided_slice %102 {offsets = [0, 0], sizes = [2, 32], strides = [1, 1]} : vector<2x64xf32> to vector<2x32xf32>
    %104 = vector.extract_strided_slice %102 {offsets = [0, 32], sizes = [2, 32], strides = [1, 1]} : vector<2x64xf32> to vector<2x32xf32>
    %105 = vector.extract_strided_slice %92 {offsets = [0, 64], sizes = [2, 32], strides = [1, 1]} : vector<2x96xf32> to vector<2x32xf32>
    %106 = vector.extract_strided_slice %94 {offsets = [0, 64], sizes = [2, 32], strides = [1, 1]} : vector<2x96xf32> to vector<2x32xf32>
    %107 = arith.addf %106, %9 : vector<2x32xf32>
    %108 = arith.mulf %103, %107 : vector<2x32xf32>
    %109 = arith.addf %105, %108 : vector<2x32xf32>
    %110 = math.tanh %109 : vector<2x32xf32>
    %cst_27 = arith.constant 1.000000e+00 : f32
    %111 = vector.broadcast %cst_27 : f32 to vector<2x32xf32>
    %112 = arith.subf %111, %104 : vector<2x32xf32>
    %113 = arith.mulf %112, %110 : vector<2x32xf32>
    %114 = arith.mulf %104, %88 : vector<2x32xf32>
    %115 = arith.addf %113, %114 : vector<2x32xf32>
    %c3 = arith.constant 3 : index
    %c0_28 = arith.constant 0 : index
    %c0_29 = arith.constant 0 : index
    %116 = vector.load %arg4[%c3, %c0_28, %c0_29] : memref<8x2x32xf32, #tpu.memory_space<vmem>>, vector<1x2x32xf32>
    %117 = vector.shape_cast %116 : vector<1x2x32xf32> to vector<2x32xf32>
    %118 = vector.shape_cast %115 : vector<2x32xf32> to vector<1x2x32xf32>
    tpu.vector_store %arg4[%c3, %c0_28, %c0_29], %118 {strides = array<i32>} : memref<8x2x32xf32, #tpu.memory_space<vmem>>, vector<1x2x32xf32>,
    %119 = vector.extract_strided_slice %5 {offsets = [8, 0], sizes = [2, 96], strides = [1, 1]} : vector<16x96xf32> to vector<2x96xf32>
    %120 = arith.truncf %115 : vector<2x32xf32> to vector<2x32xbf16>
    %cst_30 = arith.constant dense<0.000000e+00> : vector<2x96xf32>
    %121 = tpu.matmul %120, %6, %cst_30 {dimension_numbers = #tpu.dot_dimension_numbers<[1], [0], [0], [1], [0, 0, 1, 1], [], []>} : vector<2x32xbf16>, vector<32x96xbf16>, vector<2x96xf32> -> vector<2x96xf32>
    %122 = vector.extract_strided_slice %119 {offsets = [0, 0], sizes = [2, 64], strides = [1, 1]} : vector<2x96xf32> to vector<2x64xf32>
    %123 = vector.extract_strided_slice %121 {offsets = [0, 0], sizes = [2, 64], strides = [1, 1]} : vector<2x96xf32> to vector<2x64xf32>
    %124 = arith.addf %122, %123 : vector<2x64xf32>
    %125 = arith.negf %124 : vector<2x64xf32>
    %126 = math.exp %125 : vector<2x64xf32>
    %cst_31 = arith.constant 1.000000e+00 : f32
    %127 = vector.broadcast %cst_31 : f32 to vector<2x64xf32>
    %128 = arith.addf %127, %126 : vector<2x64xf32>
    %129 = arith.divf %127, %128 : vector<2x64xf32>
    %130 = vector.extract_strided_slice %129 {offsets = [0, 0], sizes = [2, 32], strides = [1, 1]} : vector<2x64xf32> to vector<2x32xf32>
    %131 = vector.extract_strided_slice %129 {offsets = [0, 32], sizes = [2, 32], strides = [1, 1]} : vector<2x64xf32> to vector<2x32xf32>
    %132 = vector.extract_strided_slice %119 {offsets = [0, 64], sizes = [2, 32], strides = [1, 1]} : vector<2x96xf32> to vector<2x32xf32>
    %133 = vector.extract_strided_slice %121 {offsets = [0, 64], sizes = [2, 32], strides = [1, 1]} : vector<2x96xf32> to vector<2x32xf32>
    %134 = arith.addf %133, %9 : vector<2x32xf32>
    %135 = arith.mulf %130, %134 : vector<2x32xf32>
    %136 = arith.addf %132, %135 : vector<2x32xf32>
    %137 = math.tanh %136 : vector<2x32xf32>
    %cst_32 = arith.constant 1.000000e+00 : f32
    %138 = vector.broadcast %cst_32 : f32 to vector<2x32xf32>
    %139 = arith.subf %138, %131 : vector<2x32xf32>
    %140 = arith.mulf %139, %137 : vector<2x32xf32>
    %141 = arith.mulf %131, %115 : vector<2x32xf32>
    %142 = arith.addf %140, %141 : vector<2x32xf32>
    %c4 = arith.constant 4 : index
    %c0_33 = arith.constant 0 : index
    %c0_34 = arith.constant 0 : index
    %143 = vector.load %arg4[%c4, %c0_33, %c0_34] : memref<8x2x32xf32, #tpu.memory_space<vmem>>, vector<1x2x32xf32>
    %144 = vector.shape_cast %143 : vector<1x2x32xf32> to vector<2x32xf32>
    %145 = vector.shape_cast %142 : vector<2x32xf32> to vector<1x2x32xf32>
    tpu.vector_store %arg4[%c4, %c0_33, %c0_34], %145 {strides = array<i32>} : memref<8x2x32xf32, #tpu.memory_space<vmem>>, vector<1x2x32xf32>,
    %146 = vector.extract_strided_slice %5 {offsets = [10, 0], sizes = [2, 96], strides = [1, 1]} : vector<16x96xf32> to vector<2x96xf32>
    %147 = arith.truncf %142 : vector<2x32xf32> to vector<2x32xbf16>
    %cst_35 = arith.constant dense<0.000000e+00> : vector<2x96xf32>
    %148 = tpu.matmul %147, %6, %cst_35 {dimension_numbers = #tpu.dot_dimension_numbers<[1], [0], [0], [1], [0, 0, 1, 1], [], []>} : vector<2x32xbf16>, vector<32x96xbf16>, vector<2x96xf32> -> vector<2x96xf32>
    %149 = vector.extract_strided_slice %146 {offsets = [0, 0], sizes = [2, 64], strides = [1, 1]} : vector<2x96xf32> to vector<2x64xf32>
    %150 = vector.extract_strided_slice %148 {offsets = [0, 0], sizes = [2, 64], strides = [1, 1]} : vector<2x96xf32> to vector<2x64xf32>
    %151 = arith.addf %149, %150 : vector<2x64xf32>
    %152 = arith.negf %151 : vector<2x64xf32>
    %153 = math.exp %152 : vector<2x64xf32>
    %cst_36 = arith.constant 1.000000e+00 : f32
    %154 = vector.broadcast %cst_36 : f32 to vector<2x64xf32>
    %155 = arith.addf %154, %153 : vector<2x64xf32>
    %156 = arith.divf %154, %155 : vector<2x64xf32>
    %157 = vector.extract_strided_slice %156 {offsets = [0, 0], sizes = [2, 32], strides = [1, 1]} : vector<2x64xf32> to vector<2x32xf32>
    %158 = vector.extract_strided_slice %156 {offsets = [0, 32], sizes = [2, 32], strides = [1, 1]} : vector<2x64xf32> to vector<2x32xf32>
    %159 = vector.extract_strided_slice %146 {offsets = [0, 64], sizes = [2, 32], strides = [1, 1]} : vector<2x96xf32> to vector<2x32xf32>
    %160 = vector.extract_strided_slice %148 {offsets = [0, 64], sizes = [2, 32], strides = [1, 1]} : vector<2x96xf32> to vector<2x32xf32>
    %161 = arith.addf %160, %9 : vector<2x32xf32>
    %162 = arith.mulf %157, %161 : vector<2x32xf32>
    %163 = arith.addf %159, %162 : vector<2x32xf32>
    %164 = math.tanh %163 : vector<2x32xf32>
    %cst_37 = arith.constant 1.000000e+00 : f32
    %165 = vector.broadcast %cst_37 : f32 to vector<2x32xf32>
    %166 = arith.subf %165, %158 : vector<2x32xf32>
    %167 = arith.mulf %166, %164 : vector<2x32xf32>
    %168 = arith.mulf %158, %142 : vector<2x32xf32>
    %169 = arith.addf %167, %168 : vector<2x32xf32>
    %c5 = arith.constant 5 : index
    %c0_38 = arith.constant 0 : index
    %c0_39 = arith.constant 0 : index
    %170 = vector.load %arg4[%c5, %c0_38, %c0_39] : memref<8x2x32xf32, #tpu.memory_space<vmem>>, vector<1x2x32xf32>
    %171 = vector.shape_cast %170 : vector<1x2x32xf32> to vector<2x32xf32>
    %172 = vector.shape_cast %169 : vector<2x32xf32> to vector<1x2x32xf32>
    tpu.vector_store %arg4[%c5, %c0_38, %c0_39], %172 {strides = array<i32>} : memref<8x2x32xf32, #tpu.memory_space<vmem>>, vector<1x2x32xf32>,
    %173 = vector.extract_strided_slice %5 {offsets = [12, 0], sizes = [2, 96], strides = [1, 1]} : vector<16x96xf32> to vector<2x96xf32>
    %174 = arith.truncf %169 : vector<2x32xf32> to vector<2x32xbf16>
    %cst_40 = arith.constant dense<0.000000e+00> : vector<2x96xf32>
    %175 = tpu.matmul %174, %6, %cst_40 {dimension_numbers = #tpu.dot_dimension_numbers<[1], [0], [0], [1], [0, 0, 1, 1], [], []>} : vector<2x32xbf16>, vector<32x96xbf16>, vector<2x96xf32> -> vector<2x96xf32>
    %176 = vector.extract_strided_slice %173 {offsets = [0, 0], sizes = [2, 64], strides = [1, 1]} : vector<2x96xf32> to vector<2x64xf32>
    %177 = vector.extract_strided_slice %175 {offsets = [0, 0], sizes = [2, 64], strides = [1, 1]} : vector<2x96xf32> to vector<2x64xf32>
    %178 = arith.addf %176, %177 : vector<2x64xf32>
    %179 = arith.negf %178 : vector<2x64xf32>
    %180 = math.exp %179 : vector<2x64xf32>
    %cst_41 = arith.constant 1.000000e+00 : f32
    %181 = vector.broadcast %cst_41 : f32 to vector<2x64xf32>
    %182 = arith.addf %181, %180 : vector<2x64xf32>
    %183 = arith.divf %181, %182 : vector<2x64xf32>
    %184 = vector.extract_strided_slice %183 {offsets = [0, 0], sizes = [2, 32], strides = [1, 1]} : vector<2x64xf32> to vector<2x32xf32>
    %185 = vector.extract_strided_slice %183 {offsets = [0, 32], sizes = [2, 32], strides = [1, 1]} : vector<2x64xf32> to vector<2x32xf32>
    %186 = vector.extract_strided_slice %173 {offsets = [0, 64], sizes = [2, 32], strides = [1, 1]} : vector<2x96xf32> to vector<2x32xf32>
    %187 = vector.extract_strided_slice %175 {offsets = [0, 64], sizes = [2, 32], strides = [1, 1]} : vector<2x96xf32> to vector<2x32xf32>
    %188 = arith.addf %187, %9 : vector<2x32xf32>
    %189 = arith.mulf %184, %188 : vector<2x32xf32>
    %190 = arith.addf %186, %189 : vector<2x32xf32>
    %191 = math.tanh %190 : vector<2x32xf32>
    %cst_42 = arith.constant 1.000000e+00 : f32
    %192 = vector.broadcast %cst_42 : f32 to vector<2x32xf32>
    %193 = arith.subf %192, %185 : vector<2x32xf32>
    %194 = arith.mulf %193, %191 : vector<2x32xf32>
    %195 = arith.mulf %185, %169 : vector<2x32xf32>
    %196 = arith.addf %194, %195 : vector<2x32xf32>
    %c6 = arith.constant 6 : index
    %c0_43 = arith.constant 0 : index
    %c0_44 = arith.constant 0 : index
    %197 = vector.load %arg4[%c6, %c0_43, %c0_44] : memref<8x2x32xf32, #tpu.memory_space<vmem>>, vector<1x2x32xf32>
    %198 = vector.shape_cast %197 : vector<1x2x32xf32> to vector<2x32xf32>
    %199 = vector.shape_cast %196 : vector<2x32xf32> to vector<1x2x32xf32>
    tpu.vector_store %arg4[%c6, %c0_43, %c0_44], %199 {strides = array<i32>} : memref<8x2x32xf32, #tpu.memory_space<vmem>>, vector<1x2x32xf32>,
    %200 = vector.extract_strided_slice %5 {offsets = [14, 0], sizes = [2, 96], strides = [1, 1]} : vector<16x96xf32> to vector<2x96xf32>
    %201 = arith.truncf %196 : vector<2x32xf32> to vector<2x32xbf16>
    %cst_45 = arith.constant dense<0.000000e+00> : vector<2x96xf32>
    %202 = tpu.matmul %201, %6, %cst_45 {dimension_numbers = #tpu.dot_dimension_numbers<[1], [0], [0], [1], [0, 0, 1, 1], [], []>} : vector<2x32xbf16>, vector<32x96xbf16>, vector<2x96xf32> -> vector<2x96xf32>
    %203 = vector.extract_strided_slice %200 {offsets = [0, 0], sizes = [2, 64], strides = [1, 1]} : vector<2x96xf32> to vector<2x64xf32>
    %204 = vector.extract_strided_slice %202 {offsets = [0, 0], sizes = [2, 64], strides = [1, 1]} : vector<2x96xf32> to vector<2x64xf32>
    %205 = arith.addf %203, %204 : vector<2x64xf32>
    %206 = arith.negf %205 : vector<2x64xf32>
    %207 = math.exp %206 : vector<2x64xf32>
    %cst_46 = arith.constant 1.000000e+00 : f32
    %208 = vector.broadcast %cst_46 : f32 to vector<2x64xf32>
    %209 = arith.addf %208, %207 : vector<2x64xf32>
    %210 = arith.divf %208, %209 : vector<2x64xf32>
    %211 = vector.extract_strided_slice %210 {offsets = [0, 0], sizes = [2, 32], strides = [1, 1]} : vector<2x64xf32> to vector<2x32xf32>
    %212 = vector.extract_strided_slice %210 {offsets = [0, 32], sizes = [2, 32], strides = [1, 1]} : vector<2x64xf32> to vector<2x32xf32>
    %213 = vector.extract_strided_slice %200 {offsets = [0, 64], sizes = [2, 32], strides = [1, 1]} : vector<2x96xf32> to vector<2x32xf32>
    %214 = vector.extract_strided_slice %202 {offsets = [0, 64], sizes = [2, 32], strides = [1, 1]} : vector<2x96xf32> to vector<2x32xf32>
    %215 = arith.addf %214, %9 : vector<2x32xf32>
    %216 = arith.mulf %211, %215 : vector<2x32xf32>
    %217 = arith.addf %213, %216 : vector<2x32xf32>
    %218 = math.tanh %217 : vector<2x32xf32>
    %cst_47 = arith.constant 1.000000e+00 : f32
    %219 = vector.broadcast %cst_47 : f32 to vector<2x32xf32>
    %220 = arith.subf %219, %212 : vector<2x32xf32>
    %221 = arith.mulf %220, %218 : vector<2x32xf32>
    %222 = arith.mulf %212, %196 : vector<2x32xf32>
    %223 = arith.addf %221, %222 : vector<2x32xf32>
    %c7 = arith.constant 7 : index
    %c0_48 = arith.constant 0 : index
    %c0_49 = arith.constant 0 : index
    %224 = vector.load %arg4[%c7, %c0_48, %c0_49] : memref<8x2x32xf32, #tpu.memory_space<vmem>>, vector<1x2x32xf32>
    %225 = vector.shape_cast %224 : vector<1x2x32xf32> to vector<2x32xf32>
    %226 = vector.shape_cast %223 : vector<2x32xf32> to vector<1x2x32xf32>
    tpu.vector_store %arg4[%c7, %c0_48, %c0_49], %226 {strides = array<i32>} : memref<8x2x32xf32, #tpu.memory_space<vmem>>, vector<1x2x32xf32>,
    return
  }
}

</mosaic_0001>

<bundles_post_ra>
// kernel: tpu_custom_call.1
= control target key start
LH: loop header
LB: loop body
LE: loop exit
PB: predicated region body
PF: predicated region fallthrough
CT: control target
= control target key end

     0   :  { %9 = vsyncpa [#allocation3], 0  ;;  %s1279_s0 = inlined_call_operand.vmem [shape: bf16[16,4], index: 0, kind: input, shape index: {}]   ;;  %s1280_s1 = inlined_call_operand.hbm [shape: bf16[4,96], index: 1, kind: input, shape index: {}]   ;;  %s1281_s2 = inlined_call_operand.vmem [shape: bf16[32,96], index: 2, kind: input, shape index: {}]   ;;  %s1282_s3 = inlined_call_operand.vmem [shape: f32[2,96], index: 3, kind: input, shape index: {}]   ;;  %s1283_s4 = inlined_call_operand.hbm [shape: f32[8,2,32], index: 4, kind: output, shape index: {}]  }
   0x1   :  { %10 = vsyncpa [#allocation4], 0  ;;  %s1039_s15 = smov [#allocation2]   ;;  %s991_s19 = scalar_lea.hbm %s1280_s1, 32 }
   0x2   :  { %s19_s16 = sshll.u32 %s1039_s15, 4  ;;  %p992_p0 = scmp.ne.s32.totalorder %s1280_s1, %s991_s19  ;;  %s20_s16 = int_to_ptr.vmem [resolvable:$true] %s19_s16 }
   0x3   :  { %p995_p1 = scmp.lt.u32.totalorder %s991_s19, %s1280_s1 }
   0x5   :  { %p997_p2 = pnand %p995_p1, %p992_p0 }
   0x7   :  { %1000 = shalt.err (!%p997_p2)
}
   0x8   :  { %s1001_s24 = scalar_lea.vmem %s20_s16, 32  ;;  %p1006_p4 = scmp.lt.s32.totalorder %s20_s16, %s20_s16 }
   0x9   :  { %p1002_p3 = scmp.ne.s32.totalorder %s20_s16, %s1001_s24  ;;  %p1007_p5 = scmp.lt.s32.totalorder %s1001_s24, %s1001_s24 }
   0xb   :  { %p1008_p6 = por %p1007_p5, %p1006_p4 }
   0xd   :  { %p1009_p7 = pnand %p1008_p6, %p1002_p3 }
   0xf   :  { %1012 = shalt.err (!%p1009_p7)
}
  0x10   :  { %22 = dma.hbm_to_vmem [thread:$0]  %s1280_s1, 32, %s20_s16, [#allocation3]  }
  0x11   :  { %1035 = dma.done.wait [#allocation3], 32  }
  0x12   :  { %1036 = vsyncadd [#allocation3], 4294967264  ;;  %v1040_v0 = vmov 0.0   ;;  %vm1041_vm0 = vmmov 0   ;;  %vm48_vm1 = vcmask 1041408   ;;  %v1094_v1 = vld [vmem:[%s1281_s2] sm:$0xff]  }
  0x13   :  { %867 = vmatprep.subr.bf16.mxu1 %v1040_v0  ;;  %861 = vmatprep.subr.bf16.mxu0 %v1040_v0  ;;  %v33_v2 = vld [vmem:[#allocation2] sm:$0x3]  ;;  %v1100_v4 = vld [vmem:[%s1281_s2 + $0x8] sm:$0xff]   ;;  %v942_v5 = vld [vmem:[%s1279_s0] sm:$0xff]   ;;  %vm44_vm2 = vcmask 31744   ;;  %v1042_v6 = vmov 0  }
  0x14   :  { %863 = vmatprep.mubr.msk.bf16.mxu0 %vm1041_vm0, %v1040_v0  ;;  %871 = vmatprep.mubr.msk.bf16.mxu1 %vm1041_vm0, %v1040_v0  ;;  %v50_v3 = vsel %vm48_vm1, %v33_v2, 0  ;;  %v1124_v8 = vld [vmem:[%s1282_s3 + $0x1] ss:$0 sm:$0xff]  ;;  %v814_v10 = vld [vmem:[%s1282_s3] ss:$0 sm:$0xff]  ;;  %s1043_s8 = smov 64  }
  0x15   :  { %868 = vmatpush3.bf16.msra.mxu1 %v1094_v1  ;;  %862 = vmatpush3.bf16.msra.mxu0 %v50_v3  ;;  %s1044_s3 = smov 96   ;;  %vm114_vm3 = vcmask 261120   ;;  %vm189_vm4 = vcmask 254976   ;;  %vm364_vm5 = vcmask 259076   ;;  %vm276_vm6 = vcmask 257026   ;;  %s1045_s9 = smov [#allocation5]  }
  0x16   :  { %869 = vmatprep.subr.bf16.mxu1 %v1040_v0  ;;  %875 = vmatprep.subr.bf16.mxu0 %v1040_v0  ;;  %vm452_vm7 = vcmask 261126   ;;  %s802_s10 = sshll.u32 %s1045_s9, 4  ;;  %s803_s10 = int_to_ptr.vmem [resolvable:$true] %s802_s10 }
  0x17   :  { %s1013_s11 = scalar_lea.vmem %s803_s10, 256  ;;  %p1018_p9 = scmp.lt.s32.totalorder %s803_s10, %s803_s10 }
  0x18   :  { %864 = vmatmul.mubr.msk.bf16.vlgmr.msra.gmra.mrb[0].mxu0 %vm44_vm2, %v942_v5  ;;  %p1014_p8 = scmp.ne.s32.totalorder %s803_s10, %s1013_s11  ;;  %p1019_p10 = scmp.lt.s32.totalorder %s1013_s11, %s1013_s11 }
  0x19   :  { %870 = vmatpush3.bf16.msra.mxu1 %v1100_v4  ;;  %876 = vmatpush3.bf16.msra.mxu0 %v1094_v1 }
  0x1a   :  { %879 = vmatprep.mubr.msk.bf16.mxu0 %vm1041_vm0, %v1040_v0  ;;  %877 = vmatprep.subr.bf16.mxu0 %v1040_v0  ;;  %p1020_p11 = por %p1019_p10, %p1018_p9 }
  0x1b   :  { %883 = vmatprep.subr.bf16.mxu1 %v1040_v0 }
  0x1c   :  { %872 = vmatmul.mubr.bf16.vlgmr.msra.gmra.mrb[0].mxu1 %v1042_v6  ;;  %p1021_p12 = pnand %p1020_p11, %p1014_p8 }
  0x1d   :  { %884 = vmatpush3.bf16.msra.mxu1 %v1094_v1  ;;  %887 = vmatprep.mubr.msk.bf16.mxu1 %vm1041_vm0, %v1040_v0 }
  0x1e   :  { %878 = vmatpush3.bf16.msra.mxu0 %v1100_v4  ;;  %885 = vmatprep.subr.bf16.mxu1 %v1040_v0 }
  0x1f   :  { %891 = vmatprep.subr.bf16.mxu0 %v1040_v0 }
  0x21   :  { %886 = vmatpush3.bf16.msra.mxu1 %v1100_v4 }
  0x22   :  { %899 = vmatprep.subr.bf16.mxu1 %v1040_v0 }
  0xeb   :  { %v86_v7 = vpop.f32.mrb[0].mxu0 }
  0xec   :  { %v865_v9 = vpop.f32.mrb[1].mxu0  ;;  %v1133_v19 = vadd.f32 %v814_v10, %v86_v7 }
  0xed   :  { %v89_v11 = vpop.f32.mrb[2].mxu0 }
  0xee   :  { %v1129_v13 = vadd.f32 %v814_v10, %v89_v11  ;;  %v866_v14 = vpop.f32.mrb[3].mxu0 }
  0xef   :  { %v152_v12 = vpop.f32.mrb[0].mxu1 }
  0xf0   :  { %v873_v15 = vpop.f32.mrb[1].mxu1  ;;  %v165_v16 = vadd.f32 %v1124_v8, %v152_v12  ;;  %v158_v20 = vadd.f32 %v152_v12, %v1133_v19 }
  0xf1   :  { %v155_v17 = vpop.f32.mrb[2].mxu1 }
  0xf2   :  { %167 = vrot.lane.b32.xlu0 %v165_v16, %s1043_s8  ;;  %v874_v18 = vpop.f32.mrb[3].mxu1  ;;  %v820_v21 = vmul.f32 -1.442695, %v158_v20 }
  0xf4   :  { %943 = vpow2.f32 %v820_v21 }
  0xfe   :  { %v944_v22 = vpop.eup %943 }
  0xff   :  { %v162_v23 = vadd.f32 1.0, %v944_v22 }
 0x101   :  { %945 = vrcp.f32 %v162_v23 }
 0x10b   :  { %v946_v24 = vpop.eup %945 }
 0x10c   :  { %v177_v30 = vsub.f32 1.0, %v946_v24  ;;  %v183_v32 = vmul.f32 0.0, %v946_v24 }
 0x164   :  { %v168_v25 = vpop.permute.xlu0 %167 }
 0x165   :  { %v170_v26 = vmul.f32 %v946_v24, %v168_v25 }
 0x167   :  { %172 = vrot.lane.b32.xlu0 %v170_v26, %s1043_s8 }
 0x1d9   :  { %v173_v27 = vpop.permute.xlu0 %172 }
 0x1da   :  { %v175_v28 = vadd.f32 %v173_v27, %v1133_v19 }
 0x1dc   :  { %947 = vtanh.f32 %v175_v28 }
 0x1e6   :  { %v948_v29 = vpop.eup %947 }
 0x1e7   :  { %179 = vrot.lane.b32.xlu1 %v948_v29, %s1044_s3 }
 0x259   :  { %v180_v31 = vpop.permute.xlu1 %179 }
 0x25a   :  { %v182_v33 = vmul.f32 %v180_v31, %v177_v30 }
 0x25c   :  { %v1139_v34 = vadd.f32 %v183_v32, %v182_v33 }
 0x25e   :  { %v191_v35 = vpack.c.bf16 %v1139_v34, %v1139_v34  ;;  %v267_v55 = vrot.slane %v1139_v34, 6 }
 0x260   :  { %193 = vrot.lane.b32.xlu1 %v191_v35, %s1044_s3 }
 0x2d2   :  { %v194_v36 = vpop.permute.xlu1 %193 }
 0x2d3   :  { %880 = vmatmul.mubr.msk.bf16.vlgmr.msra.gmra.mrb[4].mxu0 %vm114_vm3, %v194_v36 }
 0x2d4   :  { %892 = vmatpush3.bf16.msra.mxu0 %v1094_v1  ;;  %895 = vmatprep.mubr.msk.bf16.mxu0 %vm1041_vm0, %v1040_v0 }
 0x2d5   :  { %893 = vmatprep.subr.bf16.mxu0 %v1040_v0 }
 0x2d8   :  { %894 = vmatpush3.bf16.msra.mxu0 %v1100_v4 }
 0x2d9   :  { %907 = vmatprep.subr.bf16.mxu0 %v1040_v0 }
 0x3a6   :  { %v232_v37 = vpop.f32.mrb[4].mxu0 }
 0x3a7   :  { %v248_v38 = vadd.f32 %v1124_v8, %v232_v37  ;;  %v881_v39 = vpop.f32.mrb[5].mxu0  ;;  %v239_v43 = vrot.slane %v232_v37, 6 }
 0x3a8   :  { %v235_v40 = vpop.f32.mrb[6].mxu0 }
 0x3a9   :  { %v250_v41 = vrot.slane %v248_v38, 6  ;;  %v882_v42 = vpop.f32.mrb[7].mxu0  ;;  %v241_v44 = vadd.f32 %v239_v43, %v1133_v19 }
 0x3ab   :  { %251 = vrot.lane.b32.xlu0 %v250_v41, %s1043_s8  ;;  %v822_v45 = vmul.f32 -1.442695, %v241_v44 }
 0x3ad   :  { %949 = vpow2.f32 %v822_v45 }
 0x3b7   :  { %v950_v46 = vpop.eup %949 }
 0x3b8   :  { %v245_v47 = vadd.f32 1.0, %v950_v46 }
 0x3ba   :  { %951 = vrcp.f32 %v245_v47 }
 0x3c4   :  { %v952_v48 = vpop.eup %951 }
 0x3c5   :  { %v261_v54 = vsub.f32 1.0, %v952_v48  ;;  %v269_v57 = vmul.f32 %v952_v48, %v267_v55 }
 0x41d   :  { %v252_v49 = vpop.permute.xlu0 %251 }
 0x41e   :  { %v254_v50 = vmul.f32 %v952_v48, %v252_v49 }
 0x420   :  { %256 = vrot.lane.b32.xlu1 %v254_v50, %s1043_s8 }
 0x492   :  { %v257_v51 = vpop.permute.xlu1 %256 }
 0x493   :  { %v259_v52 = vadd.f32 %v257_v51, %v1133_v19 }
 0x495   :  { %953 = vtanh.f32 %v259_v52 }
 0x49f   :  { %v954_v53 = vpop.eup %953 }
 0x4a0   :  { %263 = vrot.lane.b32.xlu0 %v954_v53, %s1044_s3 }
 0x512   :  { %v264_v56 = vpop.permute.xlu0 %263 }
 0x513   :  { %v266_v58 = vmul.f32 %v264_v56, %v261_v54 }
 0x515   :  { %v1158_v59 = vadd.f32 %v269_v57, %v266_v58 }
 0x517   :  { %v278_v60 = vpack.c.bf16 %v1158_v59, %v1158_v59  ;;  %v355_v23 = vrot.slane %v1158_v59, 6 }
 0x519   :  { %v280_v61 = vrot.slane %v278_v60, 1 }
 0x51b   :  { %281 = vrot.lane.b32.xlu1 %v280_v61, %s1044_s3 }
 0x58d   :  { %v282_v62 = vpop.permute.xlu1 %281 }
 0x58e   :  { %888 = vmatmul.mubr.msk.bf16.vlgmr.msra.gmra.mrb[4].mxu1 %vm114_vm3, %v282_v62 }
 0x58f   :  { %900 = vmatpush3.bf16.msra.mxu1 %v1094_v1  ;;  %903 = vmatprep.mubr.msk.bf16.mxu1 %vm1041_vm0, %v1040_v0 }
 0x590   :  { %901 = vmatprep.subr.bf16.mxu1 %v1040_v0 }
 0x593   :  { %902 = vmatpush3.bf16.msra.mxu1 %v1100_v4 }
 0x594   :  { %915 = vmatprep.subr.bf16.mxu1 %v1040_v0 }
 0x661   :  { %v320_v63 = vpop.f32.mrb[4].mxu1 }
 0x662   :  { %v336_v2 = vadd.f32 %v1124_v8, %v320_v63  ;;  %v889_v3 = vpop.f32.mrb[5].mxu1  ;;  %v327_v9 = vrot.slane %v320_v63, 4 }
 0x663   :  { %v323_v5 = vpop.f32.mrb[6].mxu1 }
 0x664   :  { %v338_v6 = vrot.slane %v336_v2, 4  ;;  %v890_v7 = vpop.f32.mrb[7].mxu1  ;;  %v329_v10 = vadd.f32 %v327_v9, %v1133_v19 }
 0x666   :  { %339 = vrot.lane.b32.xlu0 %v338_v6, %s1043_s8  ;;  %v824_v11 = vmul.f32 -1.442695, %v329_v10 }
 0x668   :  { %955 = vpow2.f32 %v824_v11 }
 0x672   :  { %v956_v12 = vpop.eup %955 }
 0x673   :  { %v333_v14 = vadd.f32 1.0, %v956_v12 }
 0x675   :  { %957 = vrcp.f32 %v333_v14 }
 0x67f   :  { %v958_v15 = vpop.eup %957 }
 0x680   :  { %v349_v22 = vsub.f32 1.0, %v958_v15  ;;  %v357_v25 = vmul.f32 %v958_v15, %v355_v23 }
 0x6d8   :  { %v340_v16 = vpop.permute.xlu0 %339 }
 0x6d9   :  { %v342_v17 = vmul.f32 %v958_v15, %v340_v16 }
 0x6db   :  { %344 = vrot.lane.b32.xlu1 %v342_v17, %s1043_s8 }
 0x74d   :  { %v345_v18 = vpop.permute.xlu1 %344 }
 0x74e   :  { %v347_v20 = vadd.f32 %v345_v18, %v1133_v19 }
 0x750   :  { %959 = vtanh.f32 %v347_v20 }
 0x75a   :  { %v960_v21 = vpop.eup %959 }
 0x75b   :  { %351 = vrot.lane.b32.xlu0 %v960_v21, %s1044_s3 }
 0x7cd   :  { %v352_v24 = vpop.permute.xlu0 %351 }
 0x7ce   :  { %v354_v26 = vmul.f32 %v352_v24, %v349_v22 }
 0x7d0   :  { %v1177_v27 = vadd.f32 %v357_v25, %v354_v26 }
 0x7d2   :  { %v366_v28 = vpack.c.bf16 %v1177_v27, %v1177_v27  ;;  %v443_v50 = vrot.slane %v1177_v27, 6 }
 0x7d4   :  { %v368_v29 = vrot.slane %v366_v28, 2 }
 0x7d6   :  { %369 = vrot.lane.b32.xlu1 %v368_v29, %s1044_s3 }
 0x848   :  { %v370_v30 = vpop.permute.xlu1 %369 }
 0x849   :  { %896 = vmatmul.mubr.msk.bf16.vlgmr.msra.gmra.mrb[8].mxu0 %vm114_vm3, %v370_v30 }
 0x84a   :  { %908 = vmatpush3.bf16.msra.mxu0 %v1094_v1  ;;  %911 = vmatprep.mubr.msk.bf16.mxu0 %vm1041_vm0, %v1040_v0 }
 0x84b   :  { %909 = vmatprep.subr.bf16.mxu0 %v1040_v0 }
 0x84e   :  { %910 = vmatpush3.bf16.msra.mxu0 %v1100_v4 }
 0x84f   :  { %923 = vmatprep.subr.bf16.mxu0 %v1040_v0 }
 0x91c   :  { %v408_v31 = vpop.f32.mrb[8].mxu0 }
 0x91d   :  { %v424_v32 = vadd.f32 %v1124_v8, %v408_v31  ;;  %v897_v33 = vpop.f32.mrb[9].mxu0  ;;  %v415_v38 = vrot.slane %v408_v31, 2 }
 0x91e   :  { %v411_v35 = vpop.f32.mrb[10].mxu0 }
 0x91f   :  { %v426_v36 = vrot.slane %v424_v32, 2  ;;  %v898_v37 = vpop.f32.mrb[11].mxu0  ;;  %v417_v39 = vadd.f32 %v415_v38, %v1133_v19 }
 0x921   :  { %427 = vrot.lane.b32.xlu0 %v426_v36, %s1043_s8  ;;  %v826_v40 = vmul.f32 -1.442695, %v417_v39 }
 0x923   :  { %961 = vpow2.f32 %v826_v40 }
 0x92d   :  { %v962_v41 = vpop.eup %961 }
 0x92e   :  { %v421_v42 = vadd.f32 1.0, %v962_v41 }
 0x930   :  { %963 = vrcp.f32 %v421_v42 }
 0x93a   :  { %v964_v43 = vpop.eup %963 }
 0x93b   :  { %v437_v49 = vsub.f32 1.0, %v964_v43  ;;  %v445_v52 = vmul.f32 %v964_v43, %v443_v50 }
 0x993   :  { %v428_v44 = vpop.permute.xlu0 %427 }
 0x994   :  { %v430_v45 = vmul.f32 %v964_v43, %v428_v44 }
 0x996   :  { %432 = vrot.lane.b32.xlu1 %v430_v45, %s1043_s8 }
 0xa08   :  { %v433_v46 = vpop.permute.xlu1 %432 }
 0xa09   :  { %v435_v47 = vadd.f32 %v433_v46, %v1133_v19 }
 0xa0b   :  { %965 = vtanh.f32 %v435_v47 }
 0xa15   :  { %v966_v48 = vpop.eup %965 }
 0xa16   :  { %439 = vrot.lane.b32.xlu0 %v966_v48, %s1044_s3 }
 0xa88   :  { %v440_v51 = vpop.permute.xlu0 %439 }
 0xa89   :  { %v442_v53 = vmul.f32 %v440_v51, %v437_v49 }
 0xa8b   :  { %v1196_v54 = vadd.f32 %v445_v52, %v442_v53 }
 0xa8d   :  { %v454_v55 = vpack.c.bf16 %v1196_v54, %v1196_v54  ;;  %v527_v15 = vrot.slane %v1196_v54, 6 }
 0xa8f   :  { %v456_v56 = vrot.slane %v454_v55, 3 }
 0xa91   :  { %457 = vrot.lane.b32.xlu1 %v456_v56, %s1044_s3 }
 0xb03   :  { %v458_v57 = vpop.permute.xlu1 %457 }
 0xb04   :  { %904 = vmatmul.mubr.msk.bf16.vlgmr.msra.gmra.mrb[8].mxu1 %vm114_vm3, %v458_v57 }
 0xb05   :  { %916 = vmatpush3.bf16.msra.mxu1 %v1094_v1  ;;  %919 = vmatprep.mubr.msk.bf16.mxu1 %vm1041_vm0, %v1040_v0 }
 0xb06   :  { %917 = vmatprep.subr.bf16.mxu1 %v1040_v0 }
 0xb09   :  { %918 = vmatpush3.bf16.msra.mxu1 %v1100_v4 }
 0xbd7   :  { %v496_v19 = vpop.f32.mrb[8].mxu1 }
 0xbd8   :  { %v509_v58 = vadd.f32 %v1124_v8, %v496_v19  ;;  %v905_v60 = vpop.f32.mrb[9].mxu1  ;;  %v502_v63 = vadd.f32 %v496_v19, %v1129_v13 }
 0xbd9   :  { %v499_v61 = vpop.f32.mrb[10].mxu1 }
 0xbda   :  { %511 = vrot.lane.b32.xlu0 %v509_v58, %s1043_s8  ;;  %v906_v62 = vpop.f32.mrb[11].mxu1  ;;  %v828_v2 = vmul.f32 -1.442695, %v502_v63 }
 0xbdc   :  { %967 = vpow2.f32 %v828_v2 }
 0xbe6   :  { %v968_v3 = vpop.eup %967 }
 0xbe7   :  { %v506_v5 = vadd.f32 1.0, %v968_v3 }
 0xbe9   :  { %969 = vrcp.f32 %v506_v5 }
 0xbf3   :  { %v970_v6 = vpop.eup %969 }
 0xbf4   :  { %v521_v14 = vsub.f32 1.0, %v970_v6  ;;  %v529_v17 = vmul.f32 %v970_v6, %v527_v15 }
 0xc4c   :  { %v512_v7 = vpop.permute.xlu0 %511 }
 0xc4d   :  { %v514_v9 = vmul.f32 %v970_v6, %v512_v7 }
 0xc4f   :  { %516 = vrot.lane.b32.xlu1 %v514_v9, %s1043_s8 }
 0xcc1   :  { %v517_v10 = vpop.permute.xlu1 %516 }
 0xcc2   :  { %v519_v11 = vadd.f32 %v517_v10, %v1129_v13 }
 0xcc4   :  { %971 = vtanh.f32 %v519_v11 }
 0xcce   :  { %v972_v12 = vpop.eup %971 }
 0xccf   :  { %523 = vrot.lane.b32.xlu0 %v972_v12, %s1044_s3 }
 0xd41   :  { %v524_v16 = vpop.permute.xlu0 %523 }
 0xd42   :  { %v526_v18 = vmul.f32 %v524_v16, %v521_v14 }
 0xd44   :  { %v1214_v20 = vadd.f32 %v529_v17, %v526_v18 }
 0xd46   :  { %v537_v21 = vpack.c.bf16 %v1214_v20, %v1214_v20  ;;  %v613_v40 = vrot.slane %v1214_v20, 6 }
 0xd48   :  { %539 = vrot.lane.b32.xlu1 %v537_v21, %s1044_s3 }
 0xdba   :  { %v540_v22 = vpop.permute.xlu1 %539 }
 0xdbb   :  { %912 = vmatmul.mubr.msk.bf16.vlgmr.msra.gmra.mrb[12].mxu0 %vm114_vm3, %v540_v22 }
 0xdbc   :  { %924 = vmatpush3.bf16.msra.mxu0 %v1094_v1  ;;  %927 = vmatprep.mubr.msk.bf16.mxu0 %vm1041_vm0, %v1040_v0 }
 0xdbd   :  { %925 = vmatprep.subr.bf16.mxu0 %v1040_v0 }
 0xdc0   :  { %926 = vmatpush3.bf16.msra.mxu0 %v1100_v4 }
 0xe8e   :  { %v578_v23 = vpop.f32.mrb[12].mxu0 }
 0xe8f   :  { %v594_v24 = vadd.f32 %v1124_v8, %v578_v23  ;;  %v913_v25 = vpop.f32.mrb[13].mxu0  ;;  %v585_v30 = vrot.slane %v578_v23, 6 }
 0xe90   :  { %v581_v26 = vpop.f32.mrb[14].mxu0 }
 0xe91   :  { %v596_v28 = vrot.slane %v594_v24, 6  ;;  %v914_v29 = vpop.f32.mrb[15].mxu0  ;;  %v587_v31 = vadd.f32 %v585_v30, %v1129_v13 }
 0xe93   :  { %597 = vrot.lane.b32.xlu0 %v596_v28, %s1043_s8  ;;  %v830_v1 = vmul.f32 -1.442695, %v587_v31 }
 0xe95   :  { %973 = vpow2.f32 %v830_v1 }
 0xe9f   :  { %v974_v32 = vpop.eup %973 }
 0xea0   :  { %v591_v33 = vadd.f32 1.0, %v974_v32 }
 0xea2   :  { %975 = vrcp.f32 %v591_v33 }
 0xeac   :  { %v976_v0 = vpop.eup %975 }
 0xead   :  { %v607_v39 = vsub.f32 1.0, %v976_v0  ;;  %v615_v42 = vmul.f32 %v976_v0, %v613_v40 }
 0xf05   :  { %v598_v35 = vpop.permute.xlu0 %597 }
 0xf06   :  { %v600_v4 = vmul.f32 %v976_v0, %v598_v35 }
 0xf08   :  { %602 = vrot.lane.b32.xlu1 %v600_v4, %s1043_s8 }
 0xf7a   :  { %v603_v36 = vpop.permute.xlu1 %602 }
 0xf7b   :  { %v605_v37 = vadd.f32 %v603_v36, %v1129_v13 }
 0xf7d   :  { %977 = vtanh.f32 %v605_v37 }
 0xf87   :  { %v978_v38 = vpop.eup %977 }
 0xf88   :  { %609 = vrot.lane.b32.xlu0 %v978_v38, %s1044_s3 }
 0xffa   :  { %v610_v41 = vpop.permute.xlu0 %609 }
 0xffb   :  { %v612_v43 = vmul.f32 %v610_v41, %v607_v39 }
 0xffd   :  { %v1232_v44 = vadd.f32 %v615_v42, %v612_v43 }
 0xfff   :  { %v623_v45 = vpack.c.bf16 %v1232_v44, %v1232_v44  ;;  %v700_v6 = vrot.slane %v1232_v44, 6 }
0x1001   :  { %v625_v46 = vrot.slane %v623_v45, 1 }
0x1003   :  { %626 = vrot.lane.b32.xlu1 %v625_v46, %s1044_s3 }
0x1075   :  { %v627_v47 = vpop.permute.xlu1 %626 }
0x1076   :  { %920 = vmatmul.mubr.msk.bf16.vlgmr.msra.gmra.mrb[12].mxu1 %vm114_vm3, %v627_v47 }
0x1149   :  { %v665_v48 = vpop.f32.mrb[12].mxu1 }
0x114a   :  { %v681_v49 = vadd.f32 %v1124_v8, %v665_v48  ;;  %v921_v50 = vpop.f32.mrb[13].mxu1  ;;  %v672_v55 = vrot.slane %v665_v48, 4 }
0x114b   :  { %v668_v51 = vpop.f32.mrb[14].mxu1 }
0x114c   :  { %v683_v52 = vrot.slane %v681_v49, 4  ;;  %v922_v53 = vpop.f32.mrb[15].mxu1  ;;  %v674_v56 = vadd.f32 %v672_v55, %v1129_v13 }
0x114e   :  { %684 = vrot.lane.b32.xlu0 %v683_v52, %s1043_s8  ;;  %v832_v57 = vmul.f32 -1.442695, %v674_v56 }
0x1150   :  { %979 = vpow2.f32 %v832_v57 }
0x115a   :  { %v980_v19 = vpop.eup %979 }
0x115b   :  { %v678_v58 = vadd.f32 1.0, %v980_v19 }
0x115d   :  { %981 = vrcp.f32 %v678_v58 }
0x1167   :  { %v982_v60 = vpop.eup %981 }
0x1168   :  { %v694_v5 = vsub.f32 1.0, %v982_v60  ;;  %v702_v9 = vmul.f32 %v982_v60, %v700_v6 }
0x11c0   :  { %v685_v61 = vpop.permute.xlu0 %684 }
0x11c1   :  { %v687_v62 = vmul.f32 %v982_v60, %v685_v61 }
0x11c3   :  { %689 = vrot.lane.b32.xlu1 %v687_v62, %s1043_s8 }
0x1235   :  { %v690_v63 = vpop.permute.xlu1 %689 }
0x1236   :  { %v692_v2 = vadd.f32 %v690_v63, %v1129_v13 }
0x1238   :  { %983 = vtanh.f32 %v692_v2 }
0x1242   :  { %v984_v3 = vpop.eup %983 }
0x1243   :  { %696 = vrot.lane.b32.xlu0 %v984_v3, %s1044_s3 }
0x12b5   :  { %v697_v7 = vpop.permute.xlu0 %696 }
0x12b6   :  { %v699_v10 = vmul.f32 %v697_v7, %v694_v5 }
0x12b8   :  { %v703_v11 = vadd.f32 %v702_v9, %v699_v10 }
0x12ba   :  { %v710_v12 = vpack.c.bf16 %v703_v11, %v703_v11 }
0x12bc   :  { %v712_v14 = vrot.slane %v710_v12, 2 }
0x12be   :  { %713 = vrot.lane.b32.xlu1 %v712_v14, %s1044_s3 }
0x1330   :  { %v714_v15 = vpop.permute.xlu1 %713 }
0x1331   :  { %928 = vmatmul.mubr.msk.bf16.vlgmr.msra.gmra.mrb[16].mxu0 %vm114_vm3, %v714_v15 }
0x1404   :  { %v752_v16 = vpop.f32.mrb[16].mxu0 }
0x1405   :  { %v768_v17 = vadd.f32 %v1124_v8, %v752_v16  ;;  %v929_v18 = vpop.f32.mrb[17].mxu0  ;;  %v759_v24 = vrot.slane %v752_v16, 2 }
0x1406   :  { %v755_v21 = vpop.f32.mrb[18].mxu0 }
0x1407   :  { %v770_v22 = vrot.slane %v768_v17, 2  ;;  %v930_v23 = vpop.f32.mrb[19].mxu0  ;;  %v761_v25 = vadd.f32 %v759_v24, %v1129_v13 }
0x1409   :  { %771 = vrot.lane.b32.xlu0 %v770_v22, %s1043_s8  ;;  %v834_v26 = vmul.f32 -1.442695, %v761_v25 }
0x140b   :  { %985 = vpow2.f32 %v834_v26 }
0x1415   :  { %v986_v28 = vpop.eup %985 }
0x1416   :  { %v765_v29 = vadd.f32 1.0, %v986_v28 }
0x1418   :  { %987 = vrcp.f32 %v765_v29 }
0x1422   :  { %v988_v30 = vpop.eup %987 }
0x147b   :  { %v772_v31 = vpop.permute.xlu0 %771 }
0x147c   :  { %v774_v1 = vmul.f32 %v988_v30, %v772_v31 }
0x147e   :  { %776 = vrot.lane.b32.xlu1 %v774_v1, %s1043_s8 }
0x1482   :  { %186 = vrot.lane.b32.xlu1 %v1139_v34, %s1044_s3 }
0x1486   :  { %360 = vrot.lane.b32.xlu1 %v1177_v27, %s1044_s3 }
0x148a   :  { %532 = vrot.lane.b32.xlu1 %v1214_v20, %s1044_s3  ;;  %v787_v20 = vrot.slane %v703_v11, 6 }
0x148c   :  { %v789_v36 = vmul.f32 %v988_v30, %v787_v20 }
0x148e   :  { %705 = vrot.lane.b32.xlu1 %v703_v11, %s1044_s3 }
0x14f0   :  { %v777_v8 = vpop.permute.xlu1 %776 }
0x14f1   :  { %v779_v32 = vadd.f32 %v777_v8, %v1129_v13  ;;  %v781_v13 = vsub.f32 1.0, %v988_v30 }
0x14f3   :  { %989 = vtanh.f32 %v779_v32 }
0x14f4   :  { %v187_v33 = vpop.permute.xlu1 %186 }
0x14f5   :  { %190 = vst.msk [vmem:[#allocation5] sm:$0x3] %vm189_vm4, %v187_v33 }
0x14f8   :  { %v361_v0 = vpop.permute.xlu1 %360 }
0x14f9   :  { %365 = vst.msk [vmem:[#allocation5] sm:$0x30] %vm364_vm5, %v361_v0 }
0x14fc   :  { %v533_v35 = vpop.permute.xlu1 %532 }
0x14fd   :  { %v990_v34 = vpop.eup %989  ;;  %536 = vst.msk [vmem:[#allocation5 + $0x8] sm:$0x3] %vm189_vm4, %v533_v35 }
0x14fe   :  { %783 = vrot.lane.b32.xlu0 %v990_v34, %s1044_s3 }
0x1500   :  { %v706_v27 = vpop.permute.xlu1 %705 }
0x1501   :  { %709 = vst.msk [vmem:[#allocation5 + $0x8] sm:$0x30] %vm364_vm5, %v706_v27 }
0x1502   :  { %272 = vrot.lane.b32.xlu0 %v1158_v59, %s1044_s3 }
0x1506   :  { %448 = vrot.lane.b32.xlu0 %v1196_v54, %s1044_s3 }
0x150a   :  { %618 = vrot.lane.b32.xlu0 %v1232_v44, %s1044_s3 }
0x1570   :  { %v784_v4 = vpop.permute.xlu0 %783 }
0x1571   :  { %v786_v37 = vmul.f32 %v784_v4, %v781_v13 }
0x1573   :  { %v790_v38 = vadd.f32 %v789_v36, %v786_v37 }
0x1574   :  { %v273_v39 = vpop.permute.xlu0 %272 }
0x1575   :  { %277 = vst.msk [vmem:[#allocation5] sm:$0xc] %vm276_vm6, %v273_v39  ;;  %792 = vrot.lane.b32.xlu0 %v790_v38, %s1044_s3 }
0x1578   :  { %v449_v40 = vpop.permute.xlu0 %448 }
0x1579   :  { %453 = vst.msk [vmem:[#allocation5] sm:$0xc0] %vm452_vm7, %v449_v40 }
0x157c   :  { %v619_v59 = vpop.permute.xlu0 %618 }
0x157d   :  { %622 = vst.msk [vmem:[#allocation5 + $0x8] sm:$0xc] %vm276_vm6, %v619_v59 }
0x15e7   :  { %v793_v54 = vpop.permute.xlu0 %792 }
0x15e8   :  { %796 = vst.msk [vmem:[#allocation5 + $0x8] sm:$0xc0] %vm452_vm7, %v793_v54 }
0x15e9   :  { %1024 = shalt.err (!%p1021_p12)
}
0x15ea   :  { %s1025_s14 = scalar_lea.hbm %s1283_s4, 256 }
0x15eb   :  { %p1026_p13 = scmp.ne.s32.totalorder %s1283_s4, %s1025_s14  ;;  %p1029_p0 = scmp.lt.u32.totalorder %s1025_s14, %s1283_s4 }
0x15ed   :  { %p1031_p1 = pnand %p1029_p0, %p1026_p13 }
0x15ef   :  { %1034 = shalt.err (!%p1031_p1)
}
0x15f0   :  { %s1046_s19 = smov 32   ;;  %s1047_s20 = smov 2  }
0x15f1   :  { %808 = dma.vmem_to_hbm [thread:$0]  %s803_s10, 256, %s1283_s4, [#allocation4], %s1046_s19, %s1046_s19, %s1047_s20  }
0x15f2   :  { %1037 = dma.done.wait [#allocation4], 256  }
0x15f3   :  { %1038 = vsyncadd [#allocation4], 4294967040 }
0x15f4   :  { %812 = vsyncpa [#allocation3], 1 }
0x15f5   :  { %813 = vsyncpa [#allocation4], 1 }

</bundles_post_ra>
